<compile_context>
chip_gen: v6e
topology: v6e:2x2x1
jax: 0.10.0
libtpu: 0.0.40
codegen_flags: <defaults>
</compile_context>

<pallas_src>
import functools

import jax
import jax.numpy as jnp
from jax.experimental import pallas as pl
from jax.experimental.pallas import tpu as pltpu


def _cdiv(a, b):
    return (a + b - 1) // b


def _round_up(x, m):
    return _cdiv(x, m) * m


def dynamics_kernel(x_ref, w1_ref, b1_ref, w2_ref, b2_ref, out_ref, *, pack_out):
    """Fused MLP tile: out = relu(x @ W1 + b1) @ W2 + b2."""
    x = x_ref[...]                                                      # (bm, D)
    h = jnp.dot(x, w1_ref[...], preferred_element_type=jnp.float32)    # MXU
    h = jnp.maximum(h + b1_ref[...], 0.0)                              # bias + ReLU (VPU)
    out = jnp.dot(h, w2_ref[...], preferred_element_type=jnp.float32)  # MXU
    out = out + b2_ref[...]                                            # (bm, O)
    if pack_out:
        # Repack 8 batch rows per VMEM row -> lane-dense (bm//8, 8*O) store.
        out = out.reshape(out_ref.shape)
    out_ref[...] = out.astype(out_ref.dtype)


def _build_call(B_pad, D, H, O, bb, dtype, pack_out):
    n_blocks = B_pad // bb
    if pack_out:
        out_shape = jax.ShapeDtypeStruct((B_pad // 8, 8 * O), dtype)
        out_spec = pl.BlockSpec((bb // 8, 8 * O), lambda i: (i, 0))
    else:
        out_shape = jax.ShapeDtypeStruct((B_pad, O), dtype)
        out_spec = pl.BlockSpec((bb, O), lambda i: (i, 0))
    return pl.pallas_call(
        functools.partial(dynamics_kernel, pack_out=pack_out),
        out_shape=out_shape,
        grid_spec=pltpu.PrefetchScalarGridSpec(
            num_scalar_prefetch=0,
            grid=(n_blocks,),
            in_specs=[
                pl.BlockSpec((bb, D), lambda i: (i, 0)),   # batch tile of x
                pl.BlockSpec((D, H), lambda i: (0, 0)),    # W1^T (resident)
                pl.BlockSpec((1, H), lambda i: (0, 0)),    # b1   (resident)
                pl.BlockSpec((H, O), lambda i: (0, 0)),    # W2^T (resident)
                pl.BlockSpec((1, O), lambda i: (0, 0)),    # b2   (resident)
            ],
            out_specs=out_spec,
        ),
        compiler_params=pltpu.CompilerParams(
            dimension_semantics=("parallel",)),
    )


def dynamics_forward(x, w1, b1, w2, b2, *, block_b=512):
    """x: (B, obs_dim + act_dim) -> (B, obs_dim), matching DynamicsNet.forward."""
    B, D = x.shape
    H = w1.shape[0]
    O = w2.shape[0]

    # Wrapper-side layout prep: PyTorch (out, in) weights -> (in, out) so the
    # kernel issues plain x @ W; biases as (1, out) rows for broadcast adds.
    w1t = w1.T
    w2t = w2.T
    b1r = b1.reshape(1, H)
    b2r = b2.reshape(1, O)

    # Lane-dense output packing needs 8*O to be a whole number of 128-lane
    # groups (true for obs_dim=16) and the packed block's sublane dim (bb//8)
    # to stay 8-aligned, hence 64-row alignment when packing.
    pack_out = (8 * O) % 128 == 0
    align = 64 if pack_out else 8

    # cdiv-style tiling with zero-padding (never one giant block), blocks
    # balanced to minimise padding, and >=2 grid steps when the batch allows
    # it so v7x's second TensorCore gets work.
    bb_max = max(align, (block_b // align) * align)
    Ba = _round_up(B, align)
    n_blocks = _cdiv(Ba, bb_max)
    if n_blocks < 2 and Ba >= 2 * align:
        n_blocks = 2
    bb = _round_up(_cdiv(Ba, n_blocks), align)
    B_pad = n_blocks * bb

    xp = jnp.pad(x, ((0, B_pad - B), (0, 0))) if B_pad != B else x
    args = (xp, w1t, b1r, w2t, b2r)

    if pack_out:
        try:
            out = _build_call(B_pad, D, H, O, bb, x.dtype, True)(*args)
            out = out.reshape(B_pad, O)   # free: row-major metadata reshape
            return out[:B]
        except Exception:
            # This Mosaic build can't lower the in-kernel sublane->lane
            # repack; fall back to the plain (masked-store) output layout.
            # (Probe happens eagerly; call dynamics_forward outside jit.)
            pass
    out = _build_call(B_pad, D, H, O, bb, x.dtype, False)(*args)
    return out[:B]


def dynamics_reference(x, w1, b1, w2, b2):
    """Pure-JAX reference matching the PyTorch DynamicsNet forward."""
    h = jnp.maximum(x @ w1.T + b1, 0.0)
    return h @ w2.T + b2


if __name__ == "__main__":
    OBS_DIM, ACT_DIM, HIDDEN_DIM = 16, 4, 128
    B = 72                                  # deliberately ragged vs the 64-row tiles
    D = OBS_DIM + ACT_DIM

    key = jax.random.PRNGKey(0)
    k_x, k_w1, k_b1, k_w2, k_b2 = jax.random.split(key, 5)

    # PyTorch-style uniform(-1/sqrt(fan_in), 1/sqrt(fan_in)) init.
    bnd1 = 1.0 / (D ** 0.5)
    bnd2 = 1.0 / (HIDDEN_DIM ** 0.5)
    w1 = jax.random.uniform(k_w1, (HIDDEN_DIM, D), jnp.float32, -bnd1, bnd1)
    b1 = jax.random.uniform(k_b1, (HIDDEN_DIM,), jnp.float32, -bnd1, bnd1)
    w2 = jax.random.uniform(k_w2, (OBS_DIM, HIDDEN_DIM), jnp.float32, -bnd2, bnd2)
    b2 = jax.random.uniform(k_b2, (OBS_DIM,), jnp.float32, -bnd2, bnd2)

    x = jax.random.normal(k_x, (B, D), jnp.float32)

    out = jax.block_until_ready(dynamics_forward(x, w1, b1, w2, b2))

    ref = dynamics_reference(x, w1, b1, w2, b2)
    assert out.shape == (B, OBS_DIM)
    assert jnp.allclose(out, ref, atol=1e-5, rtol=1e-5), "mismatch vs reference MLP"

    print("KERNEL_OK")
</pallas_src>

<mosaic_0001>
module attributes {stable_mosaic.version = 11 : i64} {
  func.func @dynamics_kernel(%arg0: i32, %arg1: memref<64x20xf32, #tpu.memory_space<vmem>>, %arg2: memref<20x128xf32, #tpu.memory_space<vmem>>, %arg3: memref<1x128xf32, #tpu.memory_space<vmem>>, %arg4: memref<128x16xf32, #tpu.memory_space<vmem>>, %arg5: memref<1x16xf32, #tpu.memory_space<vmem>>, %arg6: memref<8x128xf32, #tpu.memory_space<vmem>>) attributes {dimension_semantics = [#tpu.dimension_semantics<parallel>], iteration_bounds = array<i64: 2>, scalar_prefetch = 0 : i64, scratch_operands = 0 : i64, tpu.core_type = #tpu.core_type<tc>, window_params = [{transform_indices = @transform_0, window_bounds = array<i64: 64, 20>}, {pipeline_mode = #tpu.pipeline_mode<synchronous>, transform_indices = @transform_1, window_bounds = array<i64: 20, 128>}, {pipeline_mode = #tpu.pipeline_mode<synchronous>, transform_indices = @transform_2, window_bounds = array<i64: 1, 128>}, {pipeline_mode = #tpu.pipeline_mode<synchronous>, transform_indices = @transform_3, window_bounds = array<i64: 128, 16>}, {pipeline_mode = #tpu.pipeline_mode<synchronous>, transform_indices = @transform_4, window_bounds = array<i64: 1, 16>}, {transform_indices = @transform_5, window_bounds = array<i64: 8, 128>}]} {
    %c0 = arith.constant 0 : index
    %c0_0 = arith.constant 0 : index
    %0 = vector.load %arg1[%c0, %c0_0] : memref<64x20xf32, #tpu.memory_space<vmem>>, vector<64x20xf32>
    %c0_1 = arith.constant 0 : index
    %c0_2 = arith.constant 0 : index
    %1 = vector.load %arg2[%c0_1, %c0_2] : memref<20x128xf32, #tpu.memory_space<vmem>>, vector<20x128xf32>
    %cst = arith.constant dense<0.000000e+00> : vector<64x128xf32>
    %2 = tpu.matmul %0, %1, %cst {dimension_numbers = #tpu.dot_dimension_numbers<[1], [0], [0], [1], [0, 0, 1, 1], [], []>} : vector<64x20xf32>, vector<20x128xf32>, vector<64x128xf32> -> vector<64x128xf32>
    %c0_3 = arith.constant 0 : index
    %c0_4 = arith.constant 0 : index
    %3 = vector.load %arg3[%c0_3, %c0_4] : memref<1x128xf32, #tpu.memory_space<vmem>>, vector<1x128xf32>
    %4 = vector.broadcast %3 : vector<1x128xf32> to vector<64x128xf32>
    %5 = arith.addf %2, %4 : vector<64x128xf32>
    %cst_5 = arith.constant 0.000000e+00 : f32
    %6 = vector.broadcast %cst_5 : f32 to vector<64x128xf32>
    %7 = arith.maximumf %5, %6 : vector<64x128xf32>
    %c0_6 = arith.constant 0 : index
    %c0_7 = arith.constant 0 : index
    %8 = vector.load %arg4[%c0_6, %c0_7] : memref<128x16xf32, #tpu.memory_space<vmem>>, vector<128x16xf32>
    %cst_8 = arith.constant dense<0.000000e+00> : vector<64x16xf32>
    %9 = tpu.matmul %7, %8, %cst_8 {dimension_numbers = #tpu.dot_dimension_numbers<[1], [0], [0], [1], [0, 0, 1, 1], [], []>} : vector<64x128xf32>, vector<128x16xf32>, vector<64x16xf32> -> vector<64x16xf32>
    %c0_9 = arith.constant 0 : index
    %c0_10 = arith.constant 0 : index
    %10 = vector.load %arg5[%c0_9, %c0_10] : memref<1x16xf32, #tpu.memory_space<vmem>>, vector<1x16xf32>
    %11 = vector.broadcast %10 : vector<1x16xf32> to vector<64x16xf32>
    %12 = arith.addf %9, %11 : vector<64x16xf32>
    %13 = vector.shape_cast %12 : vector<64x16xf32> to vector<8x128xf32>
    %c0_11 = arith.constant 0 : index
    %c0_12 = arith.constant 0 : index
    %14 = vector.load %arg6[%c0_11, %c0_12] : memref<8x128xf32, #tpu.memory_space<vmem>>, vector<8x128xf32>
    tpu.vector_store %arg6[%c0_11, %c0_12], %13 {strides = array<i32>} : memref<8x128xf32, #tpu.memory_space<vmem>>, vector<8x128xf32>,
    return
  }
  func.func @transform_0(%arg0: i32) -> (i32, i32) {
    %c0_i32 = arith.constant 0 : i32
    %c0_i32_0 = arith.constant 0 : i32
    return %arg0, %c0_i32 : i32, i32
  }
  func.func @transform_1(%arg0: i32) -> (i32, i32) {
    %c0_i32 = arith.constant 0 : i32
    %c0_i32_0 = arith.constant 0 : i32
    %c0_i32_1 = arith.constant 0 : i32
    return %c0_i32, %c0_i32_0 : i32, i32
  }
  func.func @transform_2(%arg0: i32) -> (i32, i32) {
    %c0_i32 = arith.constant 0 : i32
    %c0_i32_0 = arith.constant 0 : i32
    %c0_i32_1 = arith.constant 0 : i32
    return %c0_i32, %c0_i32_0 : i32, i32
  }
  func.func @transform_3(%arg0: i32) -> (i32, i32) {
    %c0_i32 = arith.constant 0 : i32
    %c0_i32_0 = arith.constant 0 : i32
    %c0_i32_1 = arith.constant 0 : i32
    return %c0_i32, %c0_i32_0 : i32, i32
  }
  func.func @transform_4(%arg0: i32) -> (i32, i32) {
    %c0_i32 = arith.constant 0 : i32
    %c0_i32_0 = arith.constant 0 : i32
    %c0_i32_1 = arith.constant 0 : i32
    return %c0_i32, %c0_i32_0 : i32, i32
  }
  func.func @transform_5(%arg0: i32) -> (i32, i32) {
    %c0_i32 = arith.constant 0 : i32
    %c0_i32_0 = arith.constant 0 : i32
    return %arg0, %c0_i32 : i32, i32
  }
}

module attributes {stable_mosaic.version = 11 : i64} {
  func.func @dynamics_kernel(%arg0: i32, %arg1: memref<64x20xf32, #tpu.memory_space<vmem>>, %arg2: memref<20x128xf32, #tpu.memory_space<vmem>>, %arg3: memref<1x128xf32, #tpu.memory_space<vmem>>, %arg4: memref<128x16xf32, #tpu.memory_space<vmem>>, %arg5: memref<1x16xf32, #tpu.memory_space<vmem>>, %arg6: memref<64x16xf32, #tpu.memory_space<vmem>>) attributes {dimension_semantics = [#tpu.dimension_semantics<parallel>], iteration_bounds = array<i64: 2>, scalar_prefetch = 0 : i64, scratch_operands = 0 : i64, tpu.core_type = #tpu.core_type<tc>, window_params = [{transform_indices = @transform_0, window_bounds = array<i64: 64, 20>}, {pipeline_mode = #tpu.pipeline_mode<synchronous>, transform_indices = @transform_1, window_bounds = array<i64: 20, 128>}, {pipeline_mode = #tpu.pipeline_mode<synchronous>, transform_indices = @transform_2, window_bounds = array<i64: 1, 128>}, {pipeline_mode = #tpu.pipeline_mode<synchronous>, transform_indices = @transform_3, window_bounds = array<i64: 128, 16>}, {pipeline_mode = #tpu.pipeline_mode<synchronous>, transform_indices = @transform_4, window_bounds = array<i64: 1, 16>}, {transform_indices = @transform_5, window_bounds = array<i64: 64, 16>}]} {
    %c0 = arith.constant 0 : index
    %c0_0 = arith.constant 0 : index
    %0 = vector.load %arg1[%c0, %c0_0] : memref<64x20xf32, #tpu.memory_space<vmem>>, vector<64x20xf32>
    %c0_1 = arith.constant 0 : index
    %c0_2 = arith.constant 0 : index
    %1 = vector.load %arg2[%c0_1, %c0_2] : memref<20x128xf32, #tpu.memory_space<vmem>>, vector<20x128xf32>
    %cst = arith.constant dense<0.000000e+00> : vector<64x128xf32>
    %2 = tpu.matmul %0, %1, %cst {dimension_numbers = #tpu.dot_dimension_numbers<[1], [0], [0], [1], [0, 0, 1, 1], [], []>} : vector<64x20xf32>, vector<20x128xf32>, vector<64x128xf32> -> vector<64x128xf32>
    %c0_3 = arith.constant 0 : index
    %c0_4 = arith.constant 0 : index
    %3 = vector.load %arg3[%c0_3, %c0_4] : memref<1x128xf32, #tpu.memory_space<vmem>>, vector<1x128xf32>
    %4 = vector.broadcast %3 : vector<1x128xf32> to vector<64x128xf32>
    %5 = arith.addf %2, %4 : vector<64x128xf32>
    %cst_5 = arith.constant 0.000000e+00 : f32
    %6 = vector.broadcast %cst_5 : f32 to vector<64x128xf32>
    %7 = arith.maximumf %5, %6 : vector<64x128xf32>
    %c0_6 = arith.constant 0 : index
    %c0_7 = arith.constant 0 : index
    %8 = vector.load %arg4[%c0_6, %c0_7] : memref<128x16xf32, #tpu.memory_space<vmem>>, vector<128x16xf32>
    %cst_8 = arith.constant dense<0.000000e+00> : vector<64x16xf32>
    %9 = tpu.matmul %7, %8, %cst_8 {dimension_numbers = #tpu.dot_dimension_numbers<[1], [0], [0], [1], [0, 0, 1, 1], [], []>} : vector<64x128xf32>, vector<128x16xf32>, vector<64x16xf32> -> vector<64x16xf32>
    %c0_9 = arith.constant 0 : index
    %c0_10 = arith.constant 0 : index
    %10 = vector.load %arg5[%c0_9, %c0_10] : memref<1x16xf32, #tpu.memory_space<vmem>>, vector<1x16xf32>
    %11 = vector.broadcast %10 : vector<1x16xf32> to vector<64x16xf32>
    %12 = arith.addf %9, %11 : vector<64x16xf32>
    %c0_11 = arith.constant 0 : index
    %c0_12 = arith.constant 0 : index
    %13 = vector.load %arg6[%c0_11, %c0_12] : memref<64x16xf32, #tpu.memory_space<vmem>>, vector<64x16xf32>
    tpu.vector_store %arg6[%c0_11, %c0_12], %12 {strides = array<i32>} : memref<64x16xf32, #tpu.memory_space<vmem>>, vector<64x16xf32>,
    return
  }
  func.func @transform_0(%arg0: i32) -> (i32, i32) {
    %c0_i32 = arith.constant 0 : i32
    %c0_i32_0 = arith.constant 0 : i32
    return %arg0, %c0_i32 : i32, i32
  }
  func.func @transform_1(%arg0: i32) -> (i32, i32) {
    %c0_i32 = arith.constant 0 : i32
    %c0_i32_0 = arith.constant 0 : i32
    %c0_i32_1 = arith.constant 0 : i32
    return %c0_i32, %c0_i32_0 : i32, i32
  }
  func.func @transform_2(%arg0: i32) -> (i32, i32) {
    %c0_i32 = arith.constant 0 : i32
    %c0_i32_0 = arith.constant 0 : i32
    %c0_i32_1 = arith.constant 0 : i32
    return %c0_i32, %c0_i32_0 : i32, i32
  }
  func.func @transform_3(%arg0: i32) -> (i32, i32) {
    %c0_i32 = arith.constant 0 : i32
    %c0_i32_0 = arith.constant 0 : i32
    %c0_i32_1 = arith.constant 0 : i32
    return %c0_i32, %c0_i32_0 : i32, i32
  }
  func.func @transform_4(%arg0: i32) -> (i32, i32) {
    %c0_i32 = arith.constant 0 : i32
    %c0_i32_0 = arith.constant 0 : i32
    %c0_i32_1 = arith.constant 0 : i32
    return %c0_i32, %c0_i32_0 : i32, i32
  }
  func.func @transform_5(%arg0: i32) -> (i32, i32) {
    %c0_i32 = arith.constant 0 : i32
    %c0_i32_0 = arith.constant 0 : i32
    return %arg0, %c0_i32 : i32, i32
  }
}

</mosaic_0001>

<bundles_post_ra>
// kernel: tpu_custom_call.1
= control target key start
LH: loop header
LB: loop body
LE: loop exit
PB: predicated region body
PF: predicated region fallthrough
CT: control target
= control target key end

     0   :  { %s778_s18 = smov 0   ;;  %s891_s0 = inlined_call_operand.vmem [shape: f32[128,20], index: 0, kind: input, shape index: {}]   ;;  %s892_s1 = inlined_call_operand.vmem [shape: f32[20,128], index: 1, kind: input, shape index: {}]   ;;  %s893_s2 = inlined_call_operand.vmem [shape: f32[1,128], index: 2, kind: input, shape index: {}]   ;;  %s894_s3 = inlined_call_operand.vmem [shape: f32[128,16], index: 3, kind: input, shape index: {}]   ;;  %s895_s4 = inlined_call_operand.vmem [shape: f32[1,16], index: 4, kind: input, shape index: {}]   ;;  %s896_s5 = inlined_call_operand.vmem [shape: f32[128,16], index: 5, kind: output, shape index: {}]  }
   0x1 LB: > { %s581_s19 = sadd.s32 4294967295, %s746_s18   ;;  %p585_p0 = scmp.ge.s32.totalorder %s746_s18, 1  ;;  %s746_s18 = sphi %s778_s18, %s15_s18  }
   0x2   : > { %p188_p1 = scmp.lt.s32.totalorder %s746_s18, 3 }
   0x4   : > { %p189_p2 = pnand %p585_p0, %p188_p1 }
   0x5   : > { %s586_s24 = sshll.u32 (!%p189_p2), %s581_s19, 3 }
   0x6   : > { %192 = sbr.rel (%p189_p2) target bundleno = 430 (0x1ae), region = 40  ;;  %p217_p3 = scmp.lt.s32.totalorder (!%p189_p2), %s586_s24, 15 }
   0xb   : > { %v238_v0 = vld [vmem:[%s892_s1 + $0x10] sm:$0xf]  ;;  %vm271_vm0 = vcmask 1043456   ;;  %v237_v1 = vld [vmem:[%s892_s1 + $0x8] sm:$0xff]  ;;  %v403_v2 = vld [vmem:[%s894_s3 + $0x78] sm:$0xff]  ;;  %s898_s24 = smov (!%p217_p3, %s586_s24), 15 }
   0xc   : > { %638 = vmatprep.subr.msk.mxu0 %vm271_vm0, %v238_v0  ;;  %v236_v3 = vld [vmem:[%s892_s1] sm:$0xff]  ;;  %700 = vmatprep.subr.mxu1 %v403_v2  ;;  %v402_v4 = vld [vmem:[%s894_s3 + $0x70] sm:$0xff]  ;;  %s587_s6 = sshll.u32 %s898_s24, 3  ;;  %vm246_vm1 = vcmask 162816   ;;  %v401_v5 = vld [vmem:[%s894_s3 + $0x68] sm:$0xff]  ;;  %vm516_vm2 = vcmask 130048  }
   0xd   : > { %639 = vmatpush3.msk.msra.mxu0 %vm271_vm0, %v238_v0  ;;  %716 = vmatpush3.msra.mxu1 %v403_v2  ;;  %s812_s11 = scalar_lea.vmem %s891_s0, %s587_s6  ;;  %v400_v6 = vld [vmem:[%s894_s3 + $0x60] sm:$0xff]  ;;  %v399_v11 = vld [vmem:[%s894_s3 + $0x58] sm:$0xff]  ;;  %v398_v14 = vld [vmem:[%s894_s3 + $0x50] sm:$0xff]  ;;  %s226_s23 = scalar_lea.vmem %s896_s5, %s587_s6 }
   0xe   : > { %640 = vmatprep.subr.mxu0 %v237_v1  ;;  %701 = vmatprep.subr.mxu1 %v402_v4  ;;  %v228_v7 = vld [vmem:[%s812_s11] sm:$0xff]  ;;  %v229_v8 = vld [vmem:[%s812_s11 + $0x8] sm:$0xff]  ;;  %v230_v9 = vld [vmem:[%s812_s11 + $0x10] sm:$0xff] }
   0xf   : > { %641 = vmatpush3.msra.mxu0 %v237_v1  ;;  %717 = vmatpush3.msra.mxu1 %v402_v4  ;;  %v231_v10 = vld [vmem:[%s812_s11 + $0x18] sm:$0xff]  ;;  %v232_v12 = vld [vmem:[%s812_s11 + $0x20] sm:$0xff]  ;;  %v233_v13 = vld [vmem:[%s812_s11 + $0x28] sm:$0xff] }
  0x10   : > { %642 = vmatprep.subr.mxu0 %v236_v3  ;;  %702 = vmatprep.subr.mxu1 %v401_v5  ;;  %v234_v15 = vld [vmem:[%s812_s11 + $0x30] sm:$0xff]  ;;  %v235_v16 = vld [vmem:[%s812_s11 + $0x38] sm:$0xff]  ;;  %v397_v17 = vld [vmem:[%s894_s3 + $0x48] sm:$0xff] }
  0x11   : > { %643 = vmatpush3.msra.mxu0 %v236_v3  ;;  %718 = vmatpush3.msra.mxu1 %v401_v5  ;;  %v396_v18 = vld [vmem:[%s894_s3 + $0x40] sm:$0xff]  ;;  %v395_v19 = vld [vmem:[%s894_s3 + $0x38] sm:$0xff]  ;;  %v394_v20 = vld [vmem:[%s894_s3 + $0x30] sm:$0xff] }
  0x12   : > { %656 = vmatprep.subr.mxu0 %v403_v2  ;;  %644 = vmatprep.mubr.msk.f32.mxu0 %vm246_vm1, %v228_v7  ;;  %v393_v21 = vld [vmem:[%s894_s3 + $0x28] sm:$0xff]  ;;  %v392_v22 = vld [vmem:[%s894_s3 + $0x20] sm:$0xff]  ;;  %v391_v23 = vld [vmem:[%s894_s3 + $0x18] sm:$0xff] }
  0x13   : > { %703 = vmatprep.subr.mxu1 %v400_v6  ;;  %645 = vmatmul.mubr.msk.f32.vlgmr.msra.gmra.mxu0 %vm246_vm1, %v229_v8  ;;  %v390_v24 = vld [vmem:[%s894_s3 + $0x10] sm:$0xff]  ;;  %v389_v25 = vld [vmem:[%s894_s3 + $0x8] sm:$0xff]  ;;  %v388_v26 = vld [vmem:[%s894_s3] sm:$0xff] }
  0x14   : > { %719 = vmatpush3.msra.mxu1 %v400_v6  ;;  %647 = vmatprep.mubr.msk.f32.mxu0 %vm246_vm1, %v230_v9  ;;  %v590_v27 = vld [vmem:[%s893_s2] ss:$0 sm:$0xff] }
  0x15   : > { %657 = vmatpush3.msra.mxu0 %v403_v2  ;;  %704 = vmatprep.subr.mxu1 %v399_v11  ;;  %v600_v52 = vld [vmem:[%s895_s4] ss:$0 sm:$0xff] }
  0x16   : > { %658 = vmatprep.subr.mxu0 %v402_v4  ;;  %720 = vmatpush3.msra.mxu1 %v399_v11 }
  0x17   : > { %659 = vmatpush3.msra.mxu0 %v402_v4  ;;  %705 = vmatprep.subr.mxu1 %v398_v14 }
  0x18   : > { %648 = vmatmul.mubr.msk.f32.gmra.mxu0 %vm246_vm1, %v231_v10  ;;  %660 = vmatprep.subr.mxu0 %v401_v5 }
  0x19   : > { %650 = vmatprep.mubr.msk.f32.mxu0 %vm246_vm1, %v232_v12  ;;  %661 = vmatpush3.msra.mxu0 %v401_v5 }
  0x1a   : > { %662 = vmatprep.subr.mxu0 %v400_v6  ;;  %721 = vmatpush3.msra.mxu1 %v398_v14 }
  0x1b   : > { %663 = vmatpush3.msra.mxu0 %v400_v6  ;;  %706 = vmatprep.subr.mxu1 %v397_v17 }
  0x1c   : > { %651 = vmatmul.mubr.msk.f32.gmra.mxu0 %vm246_vm1, %v233_v13  ;;  %664 = vmatprep.subr.mxu0 %v399_v11 }
  0x1d   : > { %653 = vmatprep.mubr.msk.f32.mxu0 %vm246_vm1, %v234_v15  ;;  %665 = vmatpush3.msra.mxu0 %v399_v11 }
  0x1e   : > { %666 = vmatprep.subr.mxu0 %v398_v14  ;;  %722 = vmatpush3.msra.mxu1 %v397_v17 }
  0x1f   : > { %667 = vmatpush3.msra.mxu0 %v398_v14  ;;  %707 = vmatprep.subr.mxu1 %v396_v18 }
  0x20   : > { %654 = vmatmul.mubr.msk.f32.gmra.mxu0 %vm246_vm1, %v235_v16  ;;  %668 = vmatprep.subr.mxu0 %v397_v17 }
  0x21   : > { %669 = vmatpush3.msra.mxu0 %v397_v17  ;;  %723 = vmatpush3.msra.mxu1 %v396_v18 }
  0x22   : > { %670 = vmatprep.subr.mxu0 %v396_v18  ;;  %708 = vmatprep.subr.mxu1 %v395_v19 }
  0x23   : > { %671 = vmatpush3.msra.mxu0 %v396_v18  ;;  %724 = vmatpush3.msra.mxu1 %v395_v19 }
  0x24   : > { %672 = vmatprep.subr.mxu0 %v395_v19  ;;  %709 = vmatprep.subr.mxu1 %v394_v20 }
  0x25   : > { %673 = vmatpush3.msra.mxu0 %v395_v19  ;;  %725 = vmatpush3.msra.mxu1 %v394_v20 }
  0x26   : > { %674 = vmatprep.subr.mxu0 %v394_v20  ;;  %710 = vmatprep.subr.mxu1 %v393_v21 }
  0x27   : > { %675 = vmatpush3.msra.mxu0 %v394_v20  ;;  %726 = vmatpush3.msra.mxu1 %v393_v21 }
  0x28   : > { %676 = vmatprep.subr.mxu0 %v393_v21  ;;  %711 = vmatprep.subr.mxu1 %v392_v22 }
  0x29   : > { %677 = vmatpush3.msra.mxu0 %v393_v21  ;;  %727 = vmatpush3.msra.mxu1 %v392_v22 }
  0x2a   : > { %678 = vmatprep.subr.mxu0 %v392_v22  ;;  %712 = vmatprep.subr.mxu1 %v391_v23 }
  0x2b   : > { %679 = vmatpush3.msra.mxu0 %v392_v22  ;;  %728 = vmatpush3.msra.mxu1 %v391_v23 }
  0x2c   : > { %680 = vmatprep.subr.mxu0 %v391_v23  ;;  %713 = vmatprep.subr.mxu1 %v390_v24 }
  0x2d   : > { %681 = vmatpush3.msra.mxu0 %v391_v23  ;;  %729 = vmatpush3.msra.mxu1 %v390_v24 }
  0x2e   : > { %682 = vmatprep.subr.mxu0 %v390_v24  ;;  %714 = vmatprep.subr.mxu1 %v389_v25 }
  0x2f   : > { %683 = vmatpush3.msra.mxu0 %v390_v24  ;;  %730 = vmatpush3.msra.mxu1 %v389_v25 }
  0x30   : > { %684 = vmatprep.subr.mxu0 %v389_v25  ;;  %715 = vmatprep.subr.mxu1 %v388_v26 }
  0x31   : > { %685 = vmatpush3.msra.mxu0 %v389_v25  ;;  %731 = vmatpush3.msra.mxu1 %v388_v26 }
  0x32   : > { %686 = vmatprep.subr.mxu0 %v388_v26 }
  0x33   : > { %687 = vmatpush3.msra.mxu0 %v388_v26 }
  0xd3   : > { %v646_v28 = vpop.f32.mrf.mxu0 }
  0xd4   : > { %v347_v29 = vadd.f32 %v646_v28, %v590_v27 }
  0xd5   : > { %v341_v30 = vpop.f32.mrf.mxu0 }
  0xd6   : > { %v342_v31 = vadd.f32 %v590_v27, %v341_v30  ;;  %v381_v34 = vmax.f32 %v347_v29, 0.0 }
  0xd8   : > { %v649_v32 = vpop.f32.mrf.mxu0  ;;  %v380_v33 = vmax.f32 %v342_v31, 0.0 }
  0xd9   : > { %v357_v35 = vadd.f32 %v649_v32, %v590_v27 }
  0xda   : > { %v351_v36 = vpop.f32.mrf.mxu0  ;;  %688 = vmatprep.mubr.f32.mxu0 %v380_v33 }
  0xdb   : > { %v352_v37 = vadd.f32 %v590_v27, %v351_v36  ;;  %689 = vmatmul.mubr.f32.vlgmr.msra.gmra.mxu0 %v381_v34  ;;  %v383_v40 = vmax.f32 %v357_v35, 0.0 }
  0xdc   : > { %v652_v38 = vpop.f32.mrf.mxu0 }
  0xdd   : > { %v382_v39 = vmax.f32 %v352_v37, 0.0  ;;  %v367_v41 = vadd.f32 %v652_v38, %v590_v27 }
  0xde   : > { %v361_v42 = vpop.f32.mrf.mxu0 }
  0xdf   : > { %v362_v43 = vadd.f32 %v590_v27, %v361_v42  ;;  %691 = vmatprep.mubr.f32.mxu1 %v382_v39  ;;  %v385_v46 = vmax.f32 %v367_v41, 0.0 }
  0xe0   : > { %v655_v44 = vpop.f32.mrf.mxu0  ;;  %692 = vmatmul.mubr.f32.vlgmr.msra.gmra.mxu1 %v383_v40 }
  0xe1   : > { %v384_v45 = vmax.f32 %v362_v43, 0.0  ;;  %v377_v47 = vadd.f32 %v655_v44, %v590_v27 }
  0xe2   : > { %v371_v48 = vpop.f32.mrf.mxu0 }
  0xe3   : > { %v372_v49 = vadd.f32 %v590_v27, %v371_v48  ;;  %694 = vmatprep.mubr.f32.mxu1 %v384_v45  ;;  %v387_v51 = vmax.f32 %v377_v47, 0.0 }
  0xe4   : > { %695 = vmatmul.mubr.f32.gmra.mxu1 %v385_v46 }
  0xe5   : > { %v386_v50 = vmax.f32 %v372_v49, 0.0 }
  0xe7   : > { %697 = vmatprep.mubr.f32.mxu1 %v386_v50 }
  0xe8   : > { %698 = vmatmul.mubr.f32.gmra.mxu1 %v387_v51 }
 0x19b   : > { %v690_v53 = vpop.f32.mrf.mxu0 }
 0x19c   : > { %v483_v54 = vadd.f32 %v690_v53, %v600_v52 }
 0x19d   : > { %v477_v55 = vpop.f32.mrf.mxu0 }
 0x19e   : > { %518 = vst.msk [vmem:[%s226_s23 + $0x8] sm:$0xff] %vm516_vm2, %v483_v54  ;;  %v478_v56 = vadd.f32 %v600_v52, %v477_v55 }
 0x1a0   : > { %v693_v57 = vpop.f32.mrf.mxu1  ;;  %517 = vst.msk [vmem:[%s226_s23] sm:$0xff] %vm516_vm2, %v478_v56 }
 0x1a1   : > { %v493_v58 = vadd.f32 %v693_v57, %v600_v52 }
 0x1a2   : > { %v487_v59 = vpop.f32.mrf.mxu1 }
 0x1a3   : > { %520 = vst.msk [vmem:[%s226_s23 + $0x18] sm:$0xff] %vm516_vm2, %v493_v58  ;;  %v488_v60 = vadd.f32 %v600_v52, %v487_v59 }
 0x1a4   : > { %v696_v61 = vpop.f32.mrf.mxu1 }
 0x1a5   : > { %519 = vst.msk [vmem:[%s226_s23 + $0x10] sm:$0xff] %vm516_vm2, %v488_v60  ;;  %v503_v62 = vadd.f32 %v696_v61, %v600_v52 }
 0x1a6   : > { %v497_v63 = vpop.f32.mrf.mxu1 }
 0x1a7   : > { %522 = vst.msk [vmem:[%s226_s23 + $0x28] sm:$0xff] %vm516_vm2, %v503_v62  ;;  %v498_v0 = vadd.f32 %v600_v52, %v497_v63 }
 0x1a8   : > { %v699_v1 = vpop.f32.mrf.mxu1 }
 0x1a9   : > { %521 = vst.msk [vmem:[%s226_s23 + $0x20] sm:$0xff] %vm516_vm2, %v498_v0  ;;  %v513_v2 = vadd.f32 %v699_v1, %v600_v52 }
 0x1aa   : > { %v507_v3 = vpop.f32.mrf.mxu1 }
 0x1ab   : > { %524 = vst.msk [vmem:[%s226_s23 + $0x38] sm:$0xff] %vm516_vm2, %v513_v2  ;;  %v508_v4 = vadd.f32 %v600_v52, %v507_v3 }
 0x1ad   : > { %523 = vst.msk [vmem:[%s226_s23 + $0x30] sm:$0xff] %vm516_vm2, %v508_v4 }
 0x1ae PF: > { %s15_s18 = sadd.s32 1, %s746_s18  }
 0x1af   : > { %p12_p4 = scmp.ge.s32.totalorder %s15_s18, 4  }
 0x1b1   :  { %14 = sbr.rel (!%p12_p4) target bundleno = 1 (0x1), region = 70 }

</bundles_post_ra>
